<compile_context>
chip_gen: v7x
topology: tpu7x:2x2x1
jax: 0.10.0
libtpu: 0.0.40
codegen_flags: <defaults>
</compile_context>

<pallas_src>
import jax
import jax.numpy as jnp
from jax.experimental import pallas as pl
from jax.experimental.pallas import tpu as pltpu


def _round_up(n, m):
    return ((n + m - 1) // m) * m


# ----------------------------------------------------------------------------
# Kernels
# ----------------------------------------------------------------------------

def _gat_attention(mask, hw_all, s_dst, s_src, bias):
    """PyG GATConv (heads=1) attention + aggregation for one dst-row tile.

    mask:   [T, N] bool   (edge j->i present, self-loops included)
    hw_all: [N, H] f32/bf16 (h @ W for all source nodes, resident)
    s_dst:  [T, 1] f32    (hw_dst @ att_dst, hoisted to the producing call)
    s_src:  [1, N] f32    (hw_all @ att_src, hoisted to the producing call)
    bias:   [1, H] f32
    """
    f32 = jnp.float32
    e = s_dst + s_src                                   # [T, N]
    e = jnp.maximum(e, 0.2 * e)                         # LeakyReLU(0.2), slope in (0,1)
    e = jnp.where(mask, e, -1e30)                       # mask non-edges
    e = e - jnp.max(e, axis=1, keepdims=True)           # stable softmax
    p = jnp.exp(e)                                      # masked entries underflow to 0
    rowsum = jnp.sum(p, axis=1, keepdims=True)          # [T, 1]
    # deferred normalization: aggregate un-normalized, rescale the [T,H] result
    acc = jnp.dot(p.astype(hw_all.dtype), hw_all, preferred_element_type=f32)
    return acc * pl.reciprocal(rowsum) + bias           # exact reciprocal ([T,1] only)


def fusion_kernel(x_ref, w_in_ref, b_in_ref, wf_ref, bf_ref,
                  w1_ref, ad1_ref, as1_ref, slab_ref):
    """sat/neigh linears + sigmoid gate + first GAT projection + hoisted scores.

    Output slab layout (lane-dense, width = round_up(2H+2, 128)):
        [:, 0:H]       x_fused      (residual for GAT block 1)
        [:, H:2H]      hw1 = x @ W1
        [:, 2H]        s_dst1 = hw1 @ att_dst1
        [:, 2H+1]      s_src1 = hw1 @ att_src1
        [:, 2H+2:]     zero padding
    """
    f32 = jnp.float32
    h = jnp.maximum(
        jnp.dot(x_ref[...], w_in_ref[...], preferred_element_type=f32)
        + b_in_ref[...], 0.0)                            # [T, 2H] = [relu(sat)|relu(neigh)]
    hid = h.shape[1] // 2
    sat, neigh = h[:, :hid], h[:, hid:]
    gate = jax.nn.sigmoid(
        jnp.dot(h, wf_ref[...], preferred_element_type=f32) + bf_ref[...])   # [T, 1]
    xf = gate * sat + (1.0 - gate) * neigh               # [T, H]
    hw = jnp.dot(xf, w1_ref[...], preferred_element_type=f32)                # [T, H]
    s_dst = jnp.dot(hw, ad1_ref[...], preferred_element_type=f32)            # [T, 1]
    s_src = jnp.dot(hw, as1_ref[...], preferred_element_type=f32)            # [T, 1]

    slab_ref[:, :hid] = xf
    slab_ref[:, hid:2 * hid] = hw
    slab_ref[:, 2 * hid:2 * hid + 1] = s_dst
    slab_ref[:, 2 * hid + 1:2 * hid + 2] = s_src
    pad = slab_ref.shape[1] - (2 * hid + 2)
    if pad:
        slab_ref[:, 2 * hid + 2:] = jnp.zeros((xf.shape[0], pad), f32)


def gat_block_kernel(adj_ref, hw_all_ref, slab_in_ref, s_src_ref,
                     bias_ref, sc_ref, sh_ref,
                     w_next_ref, ad_next_ref, as_next_ref,
                     slab_out_ref):
    """GAT layer 1 + folded BatchNorm + ReLU + residual, plus next-layer hw/scores."""
    f32 = jnp.float32
    H = bias_ref.shape[1]
    mask = adj_ref[...] > 0                              # int8 -> bool
    res = slab_in_ref[:, :H]
    s_dst = slab_in_ref[:, 2 * H:2 * H + 1]
    h = _gat_attention(mask, hw_all_ref[...], s_dst, s_src_ref[...], bias_ref[...])
    h = jnp.maximum(h * sc_ref[...] + sh_ref[...], 0.0)  # BatchNorm(eval) + ReLU
    x_new = h + res                                      # dropout(eval) == identity

    hw = jnp.dot(x_new, w_next_ref[...], preferred_element_type=f32)
    s_dst2 = jnp.dot(hw, ad_next_ref[...], preferred_element_type=f32)
    s_src2 = jnp.dot(hw, as_next_ref[...], preferred_element_type=f32)

    slab_out_ref[:, :H] = x_new
    slab_out_ref[:, H:2 * H] = hw
    slab_out_ref[:, 2 * H:2 * H + 1] = s_dst2
    slab_out_ref[:, 2 * H + 1:2 * H + 2] = s_src2
    pad = slab_out_ref.shape[1] - (2 * H + 2)
    if pad:
        slab_out_ref[:, 2 * H + 2:] = jnp.zeros((x_new.shape[0], pad), f32)


def gat_head_kernel(adj_ref, hw_all_ref, slab_in_ref, s_src_ref,
                    bias_ref, sc_ref, sh_ref,
                    wfc1_ref, bfc1_ref, wfc2_ref, bfc2_ref,
                    out_ref):
    """GAT layer 2 + folded BatchNorm + ReLU + residual + fc1/ReLU/fc2 head."""
    f32 = jnp.float32
    H = bias_ref.shape[1]
    mask = adj_ref[...] > 0
    res = slab_in_ref[:, :H]
    s_dst = slab_in_ref[:, 2 * H:2 * H + 1]
    h = _gat_attention(mask, hw_all_ref[...], s_dst, s_src_ref[...], bias_ref[...])
    h = jnp.maximum(h * sc_ref[...] + sh_ref[...], 0.0)
    x_new = h + res
    h = jnp.maximum(
        jnp.dot(x_new, wfc1_ref[...], preferred_element_type=f32) + bfc1_ref[...], 0.0)
    # wfc2/bfc2 are zero-padded to a lane-dense (multiple of 128) output width.
    out_ref[...] = jnp.dot(h, wfc2_ref[...], preferred_element_type=f32) + bfc2_ref[...]


# ----------------------------------------------------------------------------
# Wrapper
# ----------------------------------------------------------------------------

def build_adjacency(edge_index, num_nodes, padded_size=None):
    """Dense int8 adjacency adj[dst, src] = 1 with self-loops for real nodes.

    For static graphs build this ONCE and pass it to stage2_gnn_forward(adj=...)
    so the O(N^2) scatter is not on the per-forward path.
    """
    size = padded_size if padded_size is not None else num_nodes
    src, dst = edge_index[0], edge_index[1]
    adj = jnp.zeros((size, size), jnp.int8)
    adj = adj.at[dst, src].set(1)
    idx = jnp.arange(num_nodes)
    adj = adj.at[idx, idx].set(1)
    return adj


def stage2_gnn_forward(x, edge_index, params, sat_feature_dim, *,
                       tile_rows=256, use_bf16=True, vmem_limit_bytes=None,
                       adj=None):
    """x: [N, input_dim] f32, edge_index: [2, E] int32 (src, dst).

    tile_rows guidance: ~256 on v5e/v6e (128 MiB VMEM), ~128 on v7x (64 MiB
    per-TC VMEM) or for very large N; raise vmem_limit_bytes on v5e (16 MiB
    default scoped limit) if the adjacency tile pipeline is DMA-exposed.
    """
    N, in_dim = x.shape
    H = params["w1"].shape[0]
    out_dim = params["wfc2"].shape[1]
    out_pad = _round_up(out_dim, 128)             # lane-dense output slab
    slab_w = _round_up(2 * H + 2, 128)            # lane-dense intermediate slab

    # Row tile: multiple of 32 (int8 adj sublane packing); pad N to a tile
    # multiple so the grid has depth >= 2 for realistic sizes (megacore).
    tile = _round_up(min(tile_rows, _round_up(N, 32)), 32)
    n_pad = _round_up(N, tile)
    grid = (n_pad // tile,)

    # --- glue: padded node features / adjacency ------------------------------
    x_p = x if n_pad == N else jnp.zeros((n_pad, in_dim), x.dtype).at[:N].set(x)
    if adj is None:
        adj_p = build_adjacency(edge_index, N, n_pad)
    else:
        adj = adj.astype(jnp.int8)
        if adj.shape == (n_pad, n_pad):
            adj_p = adj
        else:
            adj_p = (jnp.zeros((n_pad, n_pad), jnp.int8)
                     .at[:adj.shape[0], :adj.shape[1]].set(adj))

    # --- glue: fuse sat/neigh linears (block-diag) and fusion-gate vectors ---
    sat_dim = sat_feature_dim
    w_in = jnp.zeros((in_dim, 2 * H), jnp.float32)
    w_in = w_in.at[:sat_dim, :H].set(params["wsat"])
    w_in = w_in.at[sat_dim:, H:].set(params["wneigh"])
    b_in = jnp.concatenate([params["bsat"], params["bneigh"]], axis=1)    # [1, 2H]
    wf = jnp.concatenate([params["wf_sat"], params["wf_neigh"]], axis=0)  # [2H, 1]

    # --- glue: pad output head to lane-dense width ---------------------------
    wfc2_pad = jnp.zeros((H, out_pad), jnp.float32).at[:, :out_dim].set(params["wfc2"])
    bfc2_pad = jnp.zeros((1, out_pad), jnp.float32).at[:, :out_dim].set(params["bfc2"])

    row = lambda shape: pl.BlockSpec(shape, lambda i: (i, 0))
    full = lambda shape: pl.BlockSpec(shape, lambda i: (0, 0))

    cp_kwargs = dict(dimension_semantics=("parallel",))
    if vmem_limit_bytes is not None:
        cp_kwargs["vmem_limit_bytes"] = vmem_limit_bytes
    cparams = pltpu.CompilerParams(**cp_kwargs)

    def split_slab(slab):
        """Extract the resident operands of the next GAT call from a slab."""
        hw = slab[:, H:2 * H]
        if use_bf16:
            hw = hw.astype(jnp.bfloat16)          # halves resident VMEM + MXU-native
        s_src = slab[:, 2 * H + 1:2 * H + 2].reshape(1, n_pad)
        return hw, s_src

    # --- call 1: feature fusion + hw1 / s_dst1 / s_src1 (tiled over rows) ----
    slab1 = pl.pallas_call(
        fusion_kernel,
        grid=grid,
        in_specs=[row((tile, in_dim)), full((in_dim, 2 * H)), full((1, 2 * H)),
                  full((2 * H, 1)), full((1, 1)),
                  full((H, H)), full((H, 1)), full((H, 1))],
        out_specs=row((tile, slab_w)),
        out_shape=jax.ShapeDtypeStruct((n_pad, slab_w), jnp.float32),
        compiler_params=cparams,
    )(x_p, w_in, b_in, wf, params["bf"],
      params["w1"], params["ad1"], params["as1"])

    hw1, s_src1 = split_slab(slab1)

    # --- call 2: GAT block 1 (+ hw2 / scores for layer 2), tiled over dst rows
    slab2 = pl.pallas_call(
        gat_block_kernel,
        grid=grid,
        in_specs=[row((tile, n_pad)),             # adj row tile (int8)
                  full((n_pad, H)),               # hw1 for all sources (resident, bf16)
                  row((tile, slab_w)),            # residual + s_dst1 (slab row tile)
                  full((1, n_pad)),               # s_src1 (resident)
                  full((1, H)), full((1, H)), full((1, H)),
                  full((H, H)), full((H, 1)), full((H, 1))],
        out_specs=row((tile, slab_w)),
        out_shape=jax.ShapeDtypeStruct((n_pad, slab_w), jnp.float32),
        compiler_params=cparams,
    )(adj_p, hw1, slab1, s_src1,
      params["bg1"], params["sc1"], params["sh1"],
      params["w2"], params["ad2"], params["as2"])

    hw2, s_src2 = split_slab(slab2)

    # --- call 3: GAT block 2 + output head, tiled over dst rows --------------
    out = pl.pallas_call(
        gat_head_kernel,
        grid=grid,
        in_specs=[row((tile, n_pad)), full((n_pad, H)), row((tile, slab_w)),
                  full((1, n_pad)),
                  full((1, H)), full((1, H)), full((1, H)),
                  full((H, H)), full((1, H)),
                  full((H, out_pad)), full((1, out_pad))],
        out_specs=row((tile, out_pad)),
        out_shape=jax.ShapeDtypeStruct((n_pad, out_pad), jnp.float32),
        compiler_params=cparams,
    )(adj_p, hw2, slab2, s_src2,
      params["bg2"], params["sc2"], params["sh2"],
      params["wfc1"], params["bfc1"], wfc2_pad, bfc2_pad)

    return out[:N, :out_dim]


# ----------------------------------------------------------------------------
# Pure-JAX reference (same math, un-fused params) for validation
# ----------------------------------------------------------------------------

def reference_forward(x, edge_index, params, sat_dim):
    N = x.shape[0]
    adj = jnp.zeros((N, N), jnp.float32)
    adj = adj.at[edge_index[1], edge_index[0]].set(1.0)
    adj = adj.at[jnp.arange(N), jnp.arange(N)].set(1.0)

    sat = jax.nn.relu(x[:, :sat_dim] @ params["wsat"] + params["bsat"])
    neigh = jax.nn.relu(x[:, sat_dim:] @ params["wneigh"] + params["bneigh"])
    gate = jax.nn.sigmoid(sat @ params["wf_sat"] + neigh @ params["wf_neigh"]
                          + params["bf"])
    h = gate * sat + (1.0 - gate) * neigh

    def gat(h, w, a_s, a_d, b):
        hw = h @ w
        e = hw @ a_d + (hw @ a_s).T
        e = jnp.where(e > 0, e, 0.2 * e)
        e = jnp.where(adj > 0, e, -1e30)
        e = e - e.max(axis=1, keepdims=True)
        p = jnp.exp(e) * (adj > 0)
        alpha = p / p.sum(axis=1, keepdims=True)
        return alpha @ hw + b

    res = h
    h = gat(h, params["w1"], params["as1"], params["ad1"], params["bg1"])
    h = jax.nn.relu(h * params["sc1"] + params["sh1"]) + res
    res = h
    h = gat(h, params["w2"], params["as2"], params["ad2"], params["bg2"])
    h = jax.nn.relu(h * params["sc2"] + params["sh2"]) + res
    h = jax.nn.relu(h @ params["wfc1"] + params["bfc1"])
    return h @ params["wfc2"] + params["bfc2"]


# ----------------------------------------------------------------------------
# Parameters (weights stored pre-transposed [in, out]; BatchNorm eval folded)
# ----------------------------------------------------------------------------

def init_params(key, sat_dim, neigh_dim, hidden, out_dim):
    ks = jax.random.split(key, 16)
    eps = 1e-5

    def lin(k, fan_in, fan_out):
        return jax.random.normal(k, (fan_in, fan_out), jnp.float32) * 0.1

    p = {}
    p["wsat"] = lin(ks[0], sat_dim, hidden)
    p["bsat"] = jnp.zeros((1, hidden), jnp.float32)
    p["wneigh"] = lin(ks[1], neigh_dim, hidden)
    p["bneigh"] = jnp.zeros((1, hidden), jnp.float32)
    # fusion_fc: Linear(2H -> 1), split into sat / neigh halves.
    p["wf_sat"] = lin(ks[2], hidden, 1)
    p["wf_neigh"] = lin(ks[3], hidden, 1)
    p["bf"] = jnp.zeros((1, 1), jnp.float32)
    # GATConv 1
    p["w1"] = lin(ks[4], hidden, hidden)
    p["as1"] = lin(ks[5], hidden, 1)
    p["ad1"] = lin(ks[6], hidden, 1)
    p["bg1"] = jnp.zeros((1, hidden), jnp.float32)
    # BatchNorm 1 (eval): fold gamma/beta/running stats into scale & shift.
    g1 = jnp.ones((1, hidden), jnp.float32)
    b1 = jnp.zeros((1, hidden), jnp.float32)
    rm1 = jnp.zeros((1, hidden), jnp.float32)
    rv1 = jnp.ones((1, hidden), jnp.float32)
    p["sc1"] = g1 / jnp.sqrt(rv1 + eps)
    p["sh1"] = b1 - rm1 * p["sc1"]
    # GATConv 2
    p["w2"] = lin(ks[7], hidden, hidden)
    p["as2"] = lin(ks[8], hidden, 1)
    p["ad2"] = lin(ks[9], hidden, 1)
    p["bg2"] = jnp.zeros((1, hidden), jnp.float32)
    g2 = jnp.ones((1, hidden), jnp.float32)
    b2 = jnp.zeros((1, hidden), jnp.float32)
    rm2 = jnp.zeros((1, hidden), jnp.float32)
    rv2 = jnp.ones((1, hidden), jnp.float32)
    p["sc2"] = g2 / jnp.sqrt(rv2 + eps)
    p["sh2"] = b2 - rm2 * p["sc2"]
    # output head
    p["wfc1"] = lin(ks[10], hidden, hidden)
    p["bfc1"] = jnp.zeros((1, hidden), jnp.float32)
    p["wfc2"] = lin(ks[11], hidden, out_dim)
    p["bfc2"] = jnp.zeros((1, out_dim), jnp.float32)
    return p


if __name__ == "__main__":
    # Small deterministic problem: 72 nodes on a bidirectional ring graph.
    # tile_rows=32 -> nodes padded to 96 rows, grid of 3 (exercises both the
    # multi-step parallel grid and the padded / all-masked destination rows).
    N = 72
    sat_feature_dim = 8
    neighbor_feature_dim = 8
    input_dim = sat_feature_dim + neighbor_feature_dim
    hidden_dim = 32
    output_dim = 8

    key = jax.random.PRNGKey(0)
    kx, kp = jax.random.split(key)
    x = jax.random.normal(kx, (N, input_dim), jnp.float32)

    idx = jnp.arange(N, dtype=jnp.int32)
    src = jnp.concatenate([idx, (idx + 1) % N])
    dst = jnp.concatenate([(idx + 1) % N, idx])
    edge_index = jnp.stack([src, dst])          # [2, E]

    params = init_params(kp, sat_feature_dim, neighbor_feature_dim,
                         hidden_dim, output_dim)

    # Static graph: build the dense adjacency once, outside the forward path.
    adj = build_adjacency(edge_index, N)

    out = stage2_gnn_forward(x, edge_index, params, sat_feature_dim,
                             tile_rows=32, use_bf16=True, adj=adj)
    jax.block_until_ready(out)
    assert out.shape == (N, output_dim)
    assert bool(jnp.all(jnp.isfinite(out)))

    ref = reference_forward(x, edge_index, params, sat_feature_dim)
    # bf16 aggregation operands -> ~1e-3 level differences vs the f32 reference.
    err = float(jnp.max(jnp.abs(out - ref)))
    assert jnp.allclose(out, ref, atol=2e-2, rtol=2e-2), err
    print("KERNEL_OK")
</pallas_src>

<mosaic_0001>
module attributes {stable_mosaic.version = 11 : i64} {
  func.func @fusion_kernel(%arg0: i32, %arg1: memref<32x16xf32, #tpu.memory_space<vmem>>, %arg2: memref<16x64xf32, #tpu.memory_space<vmem>>, %arg3: memref<1x64xf32, #tpu.memory_space<vmem>>, %arg4: memref<64x1xf32, #tpu.memory_space<vmem>>, %arg5: memref<1x1xf32, #tpu.memory_space<vmem>>, %arg6: memref<32x32xf32, #tpu.memory_space<vmem>>, %arg7: memref<32x1xf32, #tpu.memory_space<vmem>>, %arg8: memref<32x1xf32, #tpu.memory_space<vmem>>, %arg9: memref<32x128xf32, #tpu.memory_space<vmem>>) attributes {dimension_semantics = [#tpu.dimension_semantics<parallel>], iteration_bounds = array<i64: 3>, scalar_prefetch = 0 : i64, scratch_operands = 0 : i64, tpu.core_type = #tpu.core_type<tc>, window_params = [{transform_indices = @transform_0, window_bounds = array<i64: 32, 16>}, {pipeline_mode = #tpu.pipeline_mode<synchronous>, transform_indices = @transform_1, window_bounds = array<i64: 16, 64>}, {pipeline_mode = #tpu.pipeline_mode<synchronous>, transform_indices = @transform_2, window_bounds = array<i64: 1, 64>}, {pipeline_mode = #tpu.pipeline_mode<synchronous>, transform_indices = @transform_3, window_bounds = array<i64: 64, 1>}, {pipeline_mode = #tpu.pipeline_mode<synchronous>, transform_indices = @transform_4, window_bounds = array<i64: 1, 1>}, {pipeline_mode = #tpu.pipeline_mode<synchronous>, transform_indices = @transform_5, window_bounds = array<i64: 32, 32>}, {pipeline_mode = #tpu.pipeline_mode<synchronous>, transform_indices = @transform_6, window_bounds = array<i64: 32, 1>}, {pipeline_mode = #tpu.pipeline_mode<synchronous>, transform_indices = @transform_7, window_bounds = array<i64: 32, 1>}, {transform_indices = @transform_8, window_bounds = array<i64: 32, 128>}]} {
    %c0 = arith.constant 0 : index
    %c0_0 = arith.constant 0 : index
    %0 = vector.load %arg1[%c0, %c0_0] : memref<32x16xf32, #tpu.memory_space<vmem>>, vector<32x16xf32>
    %c0_1 = arith.constant 0 : index
    %c0_2 = arith.constant 0 : index
    %1 = vector.load %arg2[%c0_1, %c0_2] : memref<16x64xf32, #tpu.memory_space<vmem>>, vector<16x64xf32>
    %cst = arith.constant dense<0.000000e+00> : vector<32x64xf32>
    %2 = tpu.matmul %0, %1, %cst {dimension_numbers = #tpu.dot_dimension_numbers<[1], [0], [0], [1], [0, 0, 1, 1], [], []>} : vector<32x16xf32>, vector<16x64xf32>, vector<32x64xf32> -> vector<32x64xf32>
    %c0_3 = arith.constant 0 : index
    %c0_4 = arith.constant 0 : index
    %3 = vector.load %arg3[%c0_3, %c0_4] : memref<1x64xf32, #tpu.memory_space<vmem>>, vector<1x64xf32>
    %4 = vector.broadcast %3 : vector<1x64xf32> to vector<32x64xf32>
    %5 = arith.addf %2, %4 : vector<32x64xf32>
    %cst_5 = arith.constant 0.000000e+00 : f32
    %6 = vector.broadcast %cst_5 : f32 to vector<32x64xf32>
    %7 = arith.maximumf %5, %6 : vector<32x64xf32>
    %8 = vector.extract_strided_slice %7 {offsets = [0, 0], sizes = [32, 32], strides = [1, 1]} : vector<32x64xf32> to vector<32x32xf32>
    %9 = vector.extract_strided_slice %7 {offsets = [0, 32], sizes = [32, 32], strides = [1, 1]} : vector<32x64xf32> to vector<32x32xf32>
    %c0_6 = arith.constant 0 : index
    %c0_7 = arith.constant 0 : index
    %10 = vector.load %arg4[%c0_6, %c0_7] : memref<64x1xf32, #tpu.memory_space<vmem>>, vector<64x1xf32>
    %cst_8 = arith.constant dense<0.000000e+00> : vector<32x1xf32>
    %11 = tpu.matmul %7, %10, %cst_8 {dimension_numbers = #tpu.dot_dimension_numbers<[1], [0], [0], [1], [0, 0, 1, 1], [], []>} : vector<32x64xf32>, vector<64x1xf32>, vector<32x1xf32> -> vector<32x1xf32>
    %c0_9 = arith.constant 0 : index
    %c0_10 = arith.constant 0 : index
    %12 = vector.load %arg5[%c0_9, %c0_10] : memref<1x1xf32, #tpu.memory_space<vmem>>, vector<1x1xf32>
    %13 = vector.broadcast %12 : vector<1x1xf32> to vector<32x1xf32>
    %14 = arith.addf %11, %13 : vector<32x1xf32>
    %15 = arith.negf %14 : vector<32x1xf32>
    %16 = math.exp %15 : vector<32x1xf32>
    %cst_11 = arith.constant 1.000000e+00 : f32
    %17 = vector.broadcast %cst_11 : f32 to vector<32x1xf32>
    %18 = arith.addf %17, %16 : vector<32x1xf32>
    %19 = arith.divf %17, %18 : vector<32x1xf32>
    %20 = vector.broadcast %19 : vector<32x1xf32> to vector<32x32xf32>
    %21 = arith.mulf %20, %8 : vector<32x32xf32>
    %cst_12 = arith.constant 1.000000e+00 : f32
    %22 = vector.broadcast %cst_12 : f32 to vector<32x1xf32>
    %23 = arith.subf %22, %19 : vector<32x1xf32>
    %24 = vector.broadcast %23 : vector<32x1xf32> to vector<32x32xf32>
    %25 = arith.mulf %24, %9 : vector<32x32xf32>
    %26 = arith.addf %21, %25 : vector<32x32xf32>
    %c0_13 = arith.constant 0 : index
    %c0_14 = arith.constant 0 : index
    %27 = vector.load %arg6[%c0_13, %c0_14] : memref<32x32xf32, #tpu.memory_space<vmem>>, vector<32x32xf32>
    %cst_15 = arith.constant dense<0.000000e+00> : vector<32x32xf32>
    %28 = tpu.matmul %26, %27, %cst_15 {dimension_numbers = #tpu.dot_dimension_numbers<[1], [0], [0], [1], [0, 0, 1, 1], [], []>} : vector<32x32xf32>, vector<32x32xf32>, vector<32x32xf32> -> vector<32x32xf32>
    %c0_16 = arith.constant 0 : index
    %c0_17 = arith.constant 0 : index
    %29 = vector.load %arg7[%c0_16, %c0_17] : memref<32x1xf32, #tpu.memory_space<vmem>>, vector<32x1xf32>
    %cst_18 = arith.constant dense<0.000000e+00> : vector<32x1xf32>
    %30 = tpu.matmul %28, %29, %cst_18 {dimension_numbers = #tpu.dot_dimension_numbers<[1], [0], [0], [1], [0, 0, 1, 1], [], []>} : vector<32x32xf32>, vector<32x1xf32>, vector<32x1xf32> -> vector<32x1xf32>
    %c0_19 = arith.constant 0 : index
    %c0_20 = arith.constant 0 : index
    %31 = vector.load %arg8[%c0_19, %c0_20] : memref<32x1xf32, #tpu.memory_space<vmem>>, vector<32x1xf32>
    %cst_21 = arith.constant dense<0.000000e+00> : vector<32x1xf32>
    %32 = tpu.matmul %28, %31, %cst_21 {dimension_numbers = #tpu.dot_dimension_numbers<[1], [0], [0], [1], [0, 0, 1, 1], [], []>} : vector<32x32xf32>, vector<32x1xf32>, vector<32x1xf32> -> vector<32x1xf32>
    %c0_22 = arith.constant 0 : index
    %c0_23 = arith.constant 0 : index
    %33 = vector.load %arg9[%c0_22, %c0_23] : memref<32x128xf32, #tpu.memory_space<vmem>>, vector<32x32xf32>
    tpu.vector_store %arg9[%c0_22, %c0_23], %26 {strides = array<i32>} : memref<32x128xf32, #tpu.memory_space<vmem>>, vector<32x32xf32>,
    %c0_24 = arith.constant 0 : index
    %c32 = arith.constant 32 : index
    %34 = vector.load %arg9[%c0_24, %c32] : memref<32x128xf32, #tpu.memory_space<vmem>>, vector<32x32xf32>
    tpu.vector_store %arg9[%c0_24, %c32], %28 {strides = array<i32>} : memref<32x128xf32, #tpu.memory_space<vmem>>, vector<32x32xf32>,
    %c0_25 = arith.constant 0 : index
    %c64 = arith.constant 64 : index
    %35 = vector.load %arg9[%c0_25, %c64] : memref<32x128xf32, #tpu.memory_space<vmem>>, vector<32x1xf32>
    tpu.vector_store %arg9[%c0_25, %c64], %30 {strides = array<i32>} : memref<32x128xf32, #tpu.memory_space<vmem>>, vector<32x1xf32>,
    %c0_26 = arith.constant 0 : index
    %c65 = arith.constant 65 : index
    %36 = vector.load %arg9[%c0_26, %c65] : memref<32x128xf32, #tpu.memory_space<vmem>>, vector<32x1xf32>
    tpu.vector_store %arg9[%c0_26, %c65], %32 {strides = array<i32>} : memref<32x128xf32, #tpu.memory_space<vmem>>, vector<32x1xf32>,
    %cst_27 = arith.constant 0.000000e+00 : f32
    %37 = vector.broadcast %cst_27 : f32 to vector<32x62xf32>
    %c0_28 = arith.constant 0 : index
    %c66 = arith.constant 66 : index
    %38 = vector.load %arg9[%c0_28, %c66] : memref<32x128xf32, #tpu.memory_space<vmem>>, vector<32x62xf32>
    tpu.vector_store %arg9[%c0_28, %c66], %37 {strides = array<i32>} : memref<32x128xf32, #tpu.memory_space<vmem>>, vector<32x62xf32>,
    return
  }
  func.func @transform_0(%arg0: i32) -> (i32, i32) {
    %c0_i32 = arith.constant 0 : i32
    %c0_i32_0 = arith.constant 0 : i32
    return %arg0, %c0_i32 : i32, i32
  }
  func.func @transform_1(%arg0: i32) -> (i32, i32) {
    %c0_i32 = arith.constant 0 : i32
    %c0_i32_0 = arith.constant 0 : i32
    %c0_i32_1 = arith.constant 0 : i32
    return %c0_i32, %c0_i32_0 : i32, i32
  }
  func.func @transform_2(%arg0: i32) -> (i32, i32) {
    %c0_i32 = arith.constant 0 : i32
    %c0_i32_0 = arith.constant 0 : i32
    %c0_i32_1 = arith.constant 0 : i32
    return %c0_i32, %c0_i32_0 : i32, i32
  }
  func.func @transform_3(%arg0: i32) -> (i32, i32) {
    %c0_i32 = arith.constant 0 : i32
    %c0_i32_0 = arith.constant 0 : i32
    %c0_i32_1 = arith.constant 0 : i32
    return %c0_i32, %c0_i32_0 : i32, i32
  }
  func.func @transform_4(%arg0: i32) -> (i32, i32) {
    %c0_i32 = arith.constant 0 : i32
    %c0_i32_0 = arith.constant 0 : i32
    %c0_i32_1 = arith.constant 0 : i32
    return %c0_i32, %c0_i32_0 : i32, i32
  }
  func.func @transform_5(%arg0: i32) -> (i32, i32) {
    %c0_i32 = arith.constant 0 : i32
    %c0_i32_0 = arith.constant 0 : i32
    %c0_i32_1 = arith.constant 0 : i32
    return %c0_i32, %c0_i32_0 : i32, i32
  }
  func.func @transform_6(%arg0: i32) -> (i32, i32) {
    %c0_i32 = arith.constant 0 : i32
    %c0_i32_0 = arith.constant 0 : i32
    %c0_i32_1 = arith.constant 0 : i32
    return %c0_i32, %c0_i32_0 : i32, i32
  }
  func.func @transform_7(%arg0: i32) -> (i32, i32) {
    %c0_i32 = arith.constant 0 : i32
    %c0_i32_0 = arith.constant 0 : i32
    %c0_i32_1 = arith.constant 0 : i32
    return %c0_i32, %c0_i32_0 : i32, i32
  }
  func.func @transform_8(%arg0: i32) -> (i32, i32) {
    %c0_i32 = arith.constant 0 : i32
    %c0_i32_0 = arith.constant 0 : i32
    return %arg0, %c0_i32 : i32, i32
  }
}

</mosaic_0001>

<bundles_post_ra>
// kernel: tpu_custom_call.1
= control target key start
LH: loop header
LB: loop body
LE: loop exit
PB: predicated region body
PF: predicated region fallthrough
CT: control target
= control target key end

     0   :  { %s1700_s0 = inlined_call_operand.vmem [shape: f32[96,16], index: 0, kind: input, shape index: {}]   ;;  %s1701_s1 = inlined_call_operand.vmem [shape: f32[16,64], index: 1, kind: input, shape index: {}]   ;;  %s1702_s2 = inlined_call_operand.vmem [shape: f32[1,64], index: 2, kind: input, shape index: {}]   ;;  %s1703_s3 = inlined_call_operand.vmem [shape: f32[64,1], index: 3, kind: input, shape index: {}]   ;;  %s1704_s4 = inlined_call_operand.<no memory space> [shape: f32[1,1], index: 4, kind: input, shape index: {}]   ;;  %s1705_s5 = inlined_call_operand.vmem [shape: f32[32,32], index: 5, kind: input, shape index: {}]   ;;  %s1706_s6 = inlined_call_operand.vmem [shape: f32[32,1], index: 6, kind: input, shape index: {}]   ;;  %s1707_s7 = inlined_call_operand.vmem [shape: f32[32,1], index: 7, kind: input, shape index: {}]   ;;  %s1708_s8 = inlined_call_operand.hbm [shape: f32[96,128], index: 8, kind: output, shape index: {}]  }
   0x1   :  { %v13_v0 = vstv %s1704_s4 }
   0x2   :  { %14 = vst [vmem:[#allocation2] sm:$0x1] %v13_v0 }
   0x3   :  { %15 = vsyncpa [#allocation4], 0 }
   0x4   :  { %17 = vsyncpa [#allocation4 + $0x1], 0  ;;  %s1454_s29 = smov 0   ;;  %s1456_s30 = smov 0  }
   0x5   :  { %s1458_s9 = smov 0   ;;  %s1460_s10 = smov 0  }
   0x6 LB: > { %s1475_s4 = sadd.s32 4294967295, %s1395_s10   ;;  %s1069_s11 = sadd.s32 4294967294, %s1395_s10   ;;  %s1395_s10 = sphi %s1460_s10, %s1714_s10   ;;  %s1391_s9 = sphi %s1458_s9, %s1713_s9   ;;  %s1387_s30 = sphi %s1456_s30, %s1712_s30   ;;  %s1383_s29 = sphi %s1454_s29, %s1711_s29  }
   0x7   : > { %s1479_s12 = sadd.s32 1, %s1395_s10   ;;  %s203_s13 = sadd.s32 1, %s1391_s9 }
   0x8   : > { %s200_s14 = ssub.s32 %s1395_s10, %s1479_s12  ;;  %p213_p0 = scmp.ne.s32.totalorder %s1391_s9, %s1387_s30 }
   0x9   : > { %p201_p1 = scmp.eq.s32.totalorder %s200_s14, 0  ;;  %p214_p2 = scmp.eq.s32.totalorder %s1475_s4, 2 }
   0xa   : > { %p219_p3 = scmp.ne.s32.totalorder %s1387_s30, %s1383_s29  ;;  %p220_p4 = scmp.eq.s32.totalorder %s1069_s11, 2 }
   0xb   : > { %s1490_s15 = scalar_select %p201_p1, %s1391_s9, %s203_s13  }
   0xc   : > { %p1492_p5 = por %p214_p2, %p213_p0  ;;  %p1496_p6 = por %p220_p4, %p219_p3 }
   0xd   : > { %p1072_p7 = scmp.ge.s32.totalorder %s1395_s10, 1  ;;  %p268_p8 = scmp.lt.s32.totalorder %s1395_s10, 4 }
   0xf   : > { %p269_p9 = pnand %p1072_p7, %p268_p8 }
  0x10   : > { %v313_v1 = vld [vmem:[%s1701_s1] sm:$0xff] (!%p269_p9)  ;;  %v314_v2 = vld [vmem:[%s1701_s1 + $0x8] sm:$0xff] (!%p269_p9)  ;;  %s1074_s22 = sshll.u32 (!%p269_p9), %s1475_s4, 2  ;;  %v426_v6 = vld [vmem:[%s1703_s3 + $0x10] sm:$0xff] (!%p269_p9)  ;;  %vm322_vm0 = vcmask (!%p269_p9), 130048   ;;  %vm439_vm1 = vcmask (!%p269_p9), 523264  }
  0x11   : > { %272 = sbr.rel (%p269_p9) target bundleno = 1312 (0x520), region = 52  ;;  %v424_v3 = vld [vmem:[%s1703_s3] sm:$0xff] (!%p269_p9)  ;;  %v1224_v4 = vpack.c.bf16 (!%p269_p9), %v314_v2, %v313_v1  ;;  %p303_p10 = scmp.lt.s32.totalorder (!%p269_p9), %s1074_s22, 11  ;;  %v425_v5 = vld [vmem:[%s1703_s3 + $0x8] sm:$0xff] (!%p269_p9)  ;;  %v427_v7 = vld [vmem:[%s1703_s3 + $0x18] sm:$0xff] (!%p269_p9)  ;;  %v1397_v33 = vmov (!%p269_p9), 0  }
  0x12   : > { %v1228_v8 = vpack.c.bf16 (!%p269_p9), %v425_v5, %v424_v3  ;;  %v1232_v9 = vpack.c.bf16 (!%p269_p9), %v427_v7, %v426_v6  ;;  %v428_v10 = vld [vmem:[%s1703_s3 + $0x20] sm:$0xff] (!%p269_p9)  ;;  %v429_v11 = vld [vmem:[%s1703_s3 + $0x28] sm:$0xff] (!%p269_p9)  ;;  %v430_v17 = vld [vmem:[%s1703_s3 + $0x30] sm:$0xff] (!%p269_p9)  ;;  %1315 = vset.pattern.permute.xlu0 (!%p269_p9), %v1397_v33  ;;  %1316 = vset.pattern.permute.xlu1 (!%p269_p9), %v1397_v33  ;;  %s1398_s24 = smov (!%p269_p9), 96   ;;  %vm637_vm2 = vcmask (!%p269_p9), 261120   ;;  %s1399_s14 = smov (!%p269_p9), 32  }
  0x13   : > { %1225 = vmatprep.subr.bf16.mxu0 (!%p269_p9), %v1224_v4  ;;  %v1236_v12 = vpack.c.bf16 (!%p269_p9), %v429_v11, %v428_v10  ;;  %v431_v18 = vld [vmem:[%s1703_s3 + $0x38] sm:$0xff] (!%p269_p9)  ;;  %v1076_v20 = vld [vmem:[%s1702_s2] ss:$0 sm:$0xff] (!%p269_p9)  ;;  %v634_v0 = vld [vmem:[%s1705_s5 + $0x8] sm:$0xff] (!%p269_p9)  ;;  %vm941_vm3 = vcmask (!%p269_p9), 523520   ;;  %s1400_s18 = smov (!%p269_p9), 64  }
  0x14   : > { %1227 = vmatpush3.bf16.msra.mxu0 (!%p269_p9), %v1224_v4  ;;  %1229 = vmatprep.subr.bf16.mxu1 (!%p269_p9), %v1228_v8  ;;  %v1240_v19 = vpack.c.bf16 (!%p269_p9), %v431_v18, %v430_v17  ;;  %v1081_v34 = vld [vmem:[#allocation2] ss:$0 sm:$0xff] (!%p269_p9)  ;;  %v635_v2 = vld [vmem:[%s1705_s5 + $0x10] sm:$0xff] (!%p269_p9)  ;;  %v636_v3 = vld [vmem:[%s1705_s5 + $0x18] sm:$0xff] (!%p269_p9)  ;;  %s1401_s19 = smov (!%p269_p9), 65   ;;  %vm962_vm4 = vcmask (!%p269_p9), 531968  }
  0x15   : > { %1231 = vmatpush3.bf16.msra.mxu1 (!%p269_p9), %v1228_v8  ;;  %v633_v63 = vld [vmem:[%s1705_s5] sm:$0xff] (!%p269_p9)  ;;  %v1248_v4 = vpack.c.bf16 (!%p269_p9), %v636_v3, %v635_v2  ;;  %v736_v7 = vld [vmem:[%s1706_s6 + $0x8] sm:$0xff] (!%p269_p9)  ;;  %v737_v33 = vld [vmem:[%s1706_s6 + $0x10] sm:$0xff] (!%p269_p9)  ;;  %vm983_vm5 = vcmask (!%p269_p9), 540168   ;;  %vm988_vm6 = vcmask (!%p269_p9), 1048080   ;;  %s1107_s20 = sshll.u32 (!%p269_p9), %s1475_s4, 9 }
  0x16   : > { %1233 = vmatprep.subr.bf16.mxu1 (!%p269_p9), %v1232_v9  ;;  %v1244_v1 = vpack.c.bf16 (!%p269_p9), %v634_v0, %v633_v63  ;;  %v735_v6 = vld [vmem:[%s1706_s6] sm:$0xff] (!%p269_p9)  ;;  %v837_v11 = vld [vmem:[%s1707_s7 + $0x8] sm:$0xff] (!%p269_p9)  ;;  %s1403_s27 = smov (!%p269_p9), [#allocation3]  }
  0x17   : > { %v836_v8 = vld [vmem:[%s1707_s7] sm:$0xff] (!%p269_p9)  ;;  %v1252_v10 = vpack.c.bf16 (!%p269_p9), %v736_v7, %v735_v6  ;;  %s1337_s28 = sshll.u32 (!%p269_p9), %s1403_s27, 4  ;;  %s1338_s28 = int_to_ptr.vmem [resolvable:$false] %s1337_s28 }
  0x18   : > { %s1716_s22 = smov (!%p303_p10, %s1074_s22), 11  ;;  %1245 = vmatprep.subr.bf16.mxu0 %v1244_v1  ;;  %s1339_s11 = scalar_lea.vmem %s1338_s28, 1024 }
  0x19   : > { %s1075_s21 = sshll.u32 %s1716_s22, 3  ;;  %1235 = vmatpush3.bf16.msra.mxu1 %v1232_v9 }
  0x1a   : > { %s306_s25 = scalar_lea.vmem %s1700_s0, %s1075_s21  ;;  %1237 = vmatprep.subr.bf16.mxu1 %v1236_v12 }
  0x1b   : > { %v309_v13 = vld [vmem:[%s306_s25] sm:$0xff]  ;;  %v310_v14 = vld [vmem:[%s306_s25 + $0x8] sm:$0xff]  ;;  %v311_v15 = vld [vmem:[%s306_s25 + $0x10] sm:$0xff] }
  0x1c   : > { %1154 = vmatprep.mubr.msk.f32.mxu0 %vm322_vm0, %v309_v13  ;;  %v312_v16 = vld [vmem:[%s306_s25 + $0x18] sm:$0xff]  ;;  %v838_v13 = vld [vmem:[%s1707_s7 + $0x10] sm:$0xff]  ;;  %s299_s25 = sand.u32 1, %s1387_s30  }
  0x1d   : > { %1155 = vmatmul.mubr.msk.f32.vlgmr.msra.gmra.mrb[0].mxu0 %vm322_vm0, %v310_v14  ;;  %1239 = vmatpush3.bf16.msra.mxu1 %v1236_v12  ;;  %v1260_v12 = vpack.c.bf16 %v837_v11, %v836_v8  ;;  %v839_v14 = vld [vmem:[%s1707_s7 + $0x18] sm:$0xff]  ;;  %s1073_s22 = sshll.u32 %s299_s25, 5  ;;  %s1659_s4 = scalar_lea.sflag [#allocation4], %s299_s25 }
  0x1e   : > { %1157 = vmatprep.mubr.msk.f32.mxu0 %vm322_vm0, %v311_v15  ;;  %1241 = vmatprep.subr.bf16.mxu1 %v1240_v19  ;;  %v1264_v15 = vpack.c.bf16 %v839_v14, %v838_v13  ;;  %s1597_s13 = scalar_lea.vmem [#allocation3], %s1073_s22  ;;  %s1645_s22 = scalar_lea.hbm %s1708_s8, %s1107_s20 }
  0x1f   : > { %1247 = vmatpush3.bf16.msra.mxu0 %v1244_v1  ;;  %s1007_s21 = sshll.u32 %s1597_s13, 4  ;;  %s1647_s21 = int_to_ptr.vmem [resolvable:$true] %s1007_s21 }
  0x20   : > { %1249 = vmatprep.subr.bf16.mxu0 %v1248_v4  ;;  %s1333_s26 = scalar_lea.vmem %s1647_s21, 512  ;;  %p1340_p0 = scmp.lt.s32.totalorder %s1647_s21, %s1338_s28 }
  0x21   : > { %1158 = vmatmul.mubr.msk.f32.gmra.mrb[2].mxu0 %vm322_vm0, %v312_v16  ;;  %1243 = vmatpush3.bf16.msra.mxu1 %v1240_v19  ;;  %p1334_p11 = scmp.ne.s32.totalorder %s1647_s21, %s1333_s26  ;;  %p1341_p1 = scmp.lt.s32.totalorder %s1339_s11, %s1333_s26 }
  0x22   : > { %1261 = vmatprep.subr.bf16.mxu1 %v1260_v12 }
  0x23   : > { %1251 = vmatpush3.bf16.msra.mxu0 %v1248_v4  ;;  %p1335_p12 = pnand %p1334_p11, %p1492_p5  ;;  %p1342_p2 = por %p1341_p1, %p1340_p0 }
  0x24   : > { %1253 = vmatprep.subr.bf16.mxu0 %v1252_v10 }
  0x25   : > { %p1336_p13 = pneg %p1335_p12 }
  0x27   : > { %p1343_p3 = pnand %p1342_p2, %p1336_p13 }
  0xf0   : > { %v1156_v21 = vpop.f32.mrb[0].mxu0 }
  0xf1   : > { %v407_v22 = vadd.f32 %v1156_v21, %v1076_v20  ;;  %v401_v23 = vpop.f32.mrb[1].mxu0 }
  0xf2   : > { %v402_v24 = vadd.f32 %v1076_v20, %v401_v23 }
  0xf3   : > { %v1541_v27 = vmax.f32 %v407_v22, 0.0 }
  0xf4   : > { %v1539_v25 = vmax.f32 %v402_v24, 0.0  ;;  %v1159_v26 = vpop.f32.mrb[2].mxu0 }
  0xf5   : > { %v417_v28 = vadd.f32 %v1159_v26, %v1076_v20  ;;  %v411_v29 = vpop.f32.mrb[3].mxu0 }
  0xf6   : > { %v412_v30 = vadd.f32 %v1076_v20, %v411_v29  ;;  %1176 = vmatprep.mubr.msk.f32.mxu1 %vm439_vm1, %v1539_v25 }
  0xf7   : > { %v1544_v31 = vmax.f32 %v417_v28, 0.0  ;;  %1177 = vmatmul.mubr.msk.f32.vlgmr.msra.gmra.mrb[0].mxu1 %vm439_vm1, %v1541_v27 }
  0xf8   : > { %v1547_v32 = vmax.f32 %v412_v30, 0.0  ;;  %1263 = vmatpush3.bf16.msra.mxu1 %v1260_v12 }
  0xf9   : > { %1265 = vmatprep.subr.bf16.mxu1 %v1264_v15 }
  0xfa   : > { %1179 = vmatprep.mubr.msk.f32.mxu1 %vm439_vm1, %v1547_v32 }
  0xfb   : > { %1180 = vmatmul.mubr.msk.f32.gmra.mrb[2].mxu1 %vm439_vm1, %v1544_v31 }
  0xfc   : > { %1267 = vmatpush3.bf16.msra.mxu1 %v1264_v15 }
 0x1ca   : > { %v1178_v35 = vpop.f32.mrb[0].mxu1 }
 0x1cb   : > { %v524_v36 = vadd.f32 %v1178_v35, %v1081_v34  ;;  %v518_v37 = vpop.f32.mrb[1].mxu1 }
 0x1cc   : > { %v519_v38 = vadd.f32 %v1081_v34, %v518_v37 }
 0x1cd   : > { %v1087_v39 = vmul.f32 -1.442695, %v524_v36 }
 0x1ce   : > { %v1086_v40 = vmul.f32 -1.442695, %v519_v38  ;;  %v1181_v41 = vpop.f32.mrb[2].mxu1 }
 0x1cf   : > { %1317 = vpow2.f32 %v1087_v39  ;;  %v534_v42 = vadd.f32 %v1181_v41, %v1081_v34  ;;  %v528_v43 = vpop.f32.mrb[3].mxu1 }
 0x1d0   : > { %1319 = vpow2.f32 %v1086_v40  ;;  %v529_v44 = vadd.f32 %v1081_v34, %v528_v43  ;;  %v738_v34 = vld [vmem:[%s1706_s6 + $0x18] sm:$0xff] }
 0x1d1   : > { %v1089_v45 = vmul.f32 -1.442695, %v534_v42  ;;  %v1256_v40 = vpack.c.bf16 %v738_v34, %v737_v33 }
 0x1d2   : > { %v1088_v46 = vmul.f32 -1.442695, %v529_v44 }
 0x1d3   : > { %1321 = vpow2.f32 %v1089_v45 }
 0x1d4   : > { %1323 = vpow2.f32 %v1088_v46 }
 0x1d9   : > { %v1318_v47 = vpop.eup %1317 }
 0x1da   : > { %v1320_v48 = vpop.eup %1319  ;;  %v550_v49 = vadd.f32 1.0, %v1318_v47 }
 0x1db   : > { %v549_v50 = vadd.f32 1.0, %v1320_v48 }
 0x1dd   : > { %v1322_v51 = vpop.eup %1321  ;;  %1325 = vrcp.f32 %v549_v50 }
 0x1de   : > { %v1324_v52 = vpop.eup %1323  ;;  %1327 = vrcp.f32 %v550_v49  ;;  %v552_v53 = vadd.f32 1.0, %v1322_v51 }
 0x1df   : > { %v551_v54 = vadd.f32 1.0, %v1324_v52 }
 0x1e1   : > { %1329 = vrcp.f32 %v551_v54 }
 0x1e2   : > { %1331 = vrcp.f32 %v552_v53 }
 0x1e7   : > { %v1326_v55 = vpop.eup %1325 }
 0x1e8   : > { %v585_v56 = vsub.f32 1.0, %v1326_v55  ;;  %v1328_v57 = vpop.eup %1327 }
 0x1e9   : > { %v586_v60 = vsub.f32 1.0, %v1328_v57 }
 0x1ea   : > { %591 = vperm.xlu0 %1315, %v585_v56  }
 0x1eb   : > { %v1330_v58 = vpop.eup %1329 }
 0x1ec   : > { %v587_v59 = vsub.f32 1.0, %v1330_v58  ;;  %v1332_v61 = vpop.eup %1331 }
 0x1ed   : > { %v588_v62 = vsub.f32 1.0, %v1332_v61 }
 0x1ee   : > { %601 = vperm.xlu1 %1316, %v587_v59   ;;  %596 = vperm.xlu0 %1315, %v586_v60  }
 0x1f2   : > { %606 = vperm.xlu1 %1316, %v588_v62   ;;  %563 = vperm.xlu0 %1315, %v1326_v55  }
 0x1f6   : > { %568 = vperm.xlu1 %1316, %v1328_v57   ;;  %573 = vperm.xlu0 %1315, %v1330_v58  }
 0x1fa   : > { %578 = vperm.xlu1 %1316, %v1332_v61   ;;  %v1402_v61 = vmov 0.0  }
 0x269   : > { %v592_v5 = vpop.permute.xlu0 %591 }
 0x26a   : > { %v609_v9 = vmul.f32 %v592_v5, %v1539_v25 }
 0x26c   : > { %617 = vrot.lane.b32.xlu0 %v609_v9, %s1398_s24 }
 0x26d   : > { %v602_v16 = vpop.permute.xlu1 %601  ;;  %v597_v17 = vpop.permute.xlu0 %596 }
 0x26e   : > { %v611_v18 = vmul.f32 %v602_v16, %v1547_v32  ;;  %v610_v19 = vmul.f32 %v597_v17, %v1541_v27 }
 0x270   : > { %621 = vrot.lane.b32.xlu0 %v611_v18, %s1398_s24  ;;  %619 = vrot.lane.b32.xlu1 %v610_v19, %s1398_s24 }
 0x271   : > { %v607_v20 = vpop.permute.xlu1 %606  ;;  %v564_v22 = vpop.permute.xlu0 %563 }
 0x272   : > { %v612_v21 = vmul.f32 %v607_v20, %v1544_v31  ;;  %v581_v26 = vmul.f32 %v564_v22, %v1539_v25 }
 0x274   : > { %623 = vrot.lane.b32.xlu1 %v612_v21, %s1398_s24 }
 0x275   : > { %v569_v23 = vpop.permute.xlu1 %568  ;;  %v574_v24 = vpop.permute.xlu0 %573 }
 0x276   : > { %v582_v35 = vmul.f32 %v569_v23, %v1541_v27  ;;  %v583_v36 = vmul.f32 %v574_v24, %v1547_v32 }
 0x279   : > { %v579_v28 = vpop.permute.xlu1 %578 }
 0x27a   : > { %v584_v41 = vmul.f32 %v579_v28, %v1544_v31 }
 0x2de   : > { %v618_v29 = vpop.permute.xlu0 %617 }
 0x2df   : > { %v629_v30 = vadd.f32 %v618_v29, %v581_v26 }
 0x2e1   : > { %925 = vst.msk [vmem:[%s1597_s13] sm:$0xff] %vm637_vm2, %v629_v30  ;;  %1190 = vmatprep.mubr.msk.f32.mxu0 %vm637_vm2, %v629_v30 }
 0x2e2   : > { %v620_v25 = vpop.permute.xlu1 %619  ;;  %v622_v37 = vpop.permute.xlu0 %621 }
 0x2e3   : > { %v630_v38 = vadd.f32 %v620_v25, %v582_v35  ;;  %v631_v39 = vadd.f32 %v622_v37, %v583_v36 }
 0x2e5   : > { %926 = vst.msk [vmem:[%s1597_s13 + $0x8] sm:$0xff] %vm637_vm2, %v630_v38  ;;  %927 = vst.msk [vmem:[%s1597_s13 + $0x10] sm:$0xff] %vm637_vm2, %v631_v39  ;;  %1191 = vmatmul.mubr.msk.f32.vlgmr.msra.gmra.mrb[4].mxu0 %vm637_vm2, %v630_v38 }
 0x2e6   : > { %v624_v27 = vpop.permute.xlu1 %623  ;;  %1193 = vmatprep.mubr.msk.f32.mxu0 %vm637_vm2, %v631_v39  ;;  %1255 = vmatpush3.bf16.msra.mxu0 %v1252_v10 }
 0x2e7   : > { %v632_v32 = vadd.f32 %v624_v27, %v584_v41  ;;  %1257 = vmatprep.subr.bf16.mxu0 %v1256_v40 }
 0x2e9   : > { %928 = vst.msk [vmem:[%s1597_s13 + $0x18] sm:$0xff] %vm637_vm2, %v632_v32  ;;  %1194 = vmatmul.mubr.msk.f32.gmra.mrb[6].mxu0 %vm637_vm2, %v632_v32 }
 0x2ea   : > { %1259 = vmatpush3.bf16.msra.mxu0 %v1256_v40 }
 0x3b8   : > { %v1192_v42 = vpop.f32.mrb[4].mxu0 }
 0x3b9   : > { %931 = vrot.lane.b32.xlu1 %v1192_v42, %s1399_s14  ;;  %v716_v31 = vpop.f32.mrb[5].mxu0 }
 0x3ba   : > { %929 = vrot.lane.b32.xlu0 %v716_v31, %s1399_s14  ;;  %1204 = vmatprep.mubr.msk.f32.mxu0 %vm637_vm2, %v716_v31 }
 0x3bb   : > { %1218 = vmatprep.mubr.msk.f32.mxu1 %vm637_vm2, %v716_v31  ;;  %1205 = vmatmul.mubr.msk.f32.vlgmr.msra.gmra.mrb[8].mxu0 %vm637_vm2, %v1192_v42 }
 0x3bc   : > { %1219 = vmatmul.mubr.msk.f32.vlgmr.msra.gmra.mrb[4].mxu1 %vm637_vm2, %v1192_v42  ;;  %v1195_v43 = vpop.f32.mrb[6].mxu0 }
 0x3bd   : > { %935 = vrot.lane.b32.xlu1 %v1195_v43, %s1399_s14  ;;  %v726_v44 = vpop.f32.mrb[7].mxu0 }
 0x3be   : > { %933 = vrot.lane.b32.xlu0 %v726_v44, %s1399_s14  ;;  %1207 = vmatprep.mubr.msk.f32.mxu0 %vm637_vm2, %v726_v44 }
 0x3bf   : > { %1221 = vmatprep.mubr.msk.f32.mxu1 %vm637_vm2, %v726_v44  ;;  %1208 = vmatmul.mubr.msk.f32.gmra.mrb[10].mxu0 %vm637_vm2, %v1195_v43 }
 0x3c0   : > { %1222 = vmatmul.mubr.msk.f32.gmra.mrb[6].mxu1 %vm637_vm2, %v1195_v43 }
 0x42b   : > { %v932_v45 = vpop.permute.xlu1 %931 }
 0x42c   : > { %943 = vst.msk [vmem:[%s1597_s13 + $0x8] sm:$0xff] %vm941_vm3, %v932_v45  ;;  %v930_v46 = vpop.permute.xlu0 %929 }
 0x42d   : > { %942 = vst.msk [vmem:[%s1597_s13] sm:$0xff] %vm941_vm3, %v930_v46 }
 0x42f   : > { %v936_v47 = vpop.permute.xlu1 %935 }
 0x430   : > { %945 = vst.msk [vmem:[%s1597_s13 + $0x18] sm:$0xff] %vm941_vm3, %v936_v47  ;;  %v934_v48 = vpop.permute.xlu0 %933 }
 0x431   : > { %944 = vst.msk [vmem:[%s1597_s13 + $0x10] sm:$0xff] %vm941_vm3, %v934_v48 }
 0x48e   : > { %v1206_v49 = vpop.f32.mrb[8].mxu0 }
 0x48f   : > { %v1220_v50 = vpop.f32.mrb[4].mxu1  ;;  %952 = vrot.lane.b32.xlu1 %v1206_v49, %s1400_s18  ;;  %v817_v51 = vpop.f32.mrb[9].mxu0 }
 0x490   : > { %v906_v52 = vpop.f32.mrb[5].mxu1  ;;  %950 = vrot.lane.b32.xlu0 %v817_v51, %s1400_s18 }
 0x492   : > { %v1209_v53 = vpop.f32.mrb[10].mxu0 }
 0x493   : > { %v1223_v54 = vpop.f32.mrb[6].mxu1  ;;  %973 = vrot.lane.b32.xlu1 %v1220_v50, %s1401_s19  ;;  %v827_v55 = vpop.f32.mrb[11].mxu0 }
 0x494   : > { %v916_v56 = vpop.f32.mrb[7].mxu1  ;;  %971 = vrot.lane.b32.xlu0 %v906_v52, %s1401_s19 }
 0x497   : > { %956 = vrot.lane.b32.xlu1 %v1209_v53, %s1400_s18 }
 0x498   : > { %954 = vrot.lane.b32.xlu0 %v827_v55, %s1400_s18 }
 0x49b   : > { %977 = vrot.lane.b32.xlu1 %v1223_v54, %s1401_s19 }
 0x49c   : > { %975 = vrot.lane.b32.xlu0 %v916_v56, %s1401_s19 }
 0x501   : > { %v953_v57 = vpop.permute.xlu1 %952 }
 0x502   : > { %964 = vst.msk [vmem:[%s1597_s13 + $0x8] sm:$0xff] %vm962_vm4, %v953_v57  ;;  %v951_v58 = vpop.permute.xlu0 %950 }
 0x503   : > { %963 = vst.msk [vmem:[%s1597_s13] sm:$0xff] %vm962_vm4, %v951_v58 }
 0x505   : > { %v974_v59 = vpop.permute.xlu1 %973 }
 0x506   : > { %985 = vst.msk [vmem:[%s1597_s13 + $0x8] sm:$0xff] %vm983_vm5, %v974_v59  ;;  %v972_v60 = vpop.permute.xlu0 %971 }
 0x507   : > { %990 = vst.msk [vmem:[%s1597_s13 + $0x8] sm:$0xff] %vm988_vm6, %v1402_v61 }
 0x508   : > { %984 = vst.msk [vmem:[%s1597_s13] sm:$0xff] %vm983_vm5, %v972_v60 }
 0x509   : > { %989 = vst.msk [vmem:[%s1597_s13] sm:$0xff] %vm988_vm6, %v1402_v61  ;;  %v957_v62 = vpop.permute.xlu1 %956 }
 0x50a   : > { %966 = vst.msk [vmem:[%s1597_s13 + $0x18] sm:$0xff] %vm962_vm4, %v957_v62  ;;  %v955_v63 = vpop.permute.xlu0 %954 }
 0x50b   : > { %965 = vst.msk [vmem:[%s1597_s13 + $0x10] sm:$0xff] %vm962_vm4, %v955_v63 }
 0x50d   : > { %v978_v0 = vpop.permute.xlu1 %977 }
 0x50e   : > { %987 = vst.msk [vmem:[%s1597_s13 + $0x18] sm:$0xff] %vm983_vm5, %v978_v0  ;;  %v976_v1 = vpop.permute.xlu0 %975 }
 0x50f   : > { %992 = vst.msk [vmem:[%s1597_s13 + $0x18] sm:$0xff] %vm988_vm6, %v1402_v61 }
 0x510   : > { %986 = vst.msk [vmem:[%s1597_s13 + $0x10] sm:$0xff] %vm983_vm5, %v976_v1 }
 0x511   : > { %991 = vst.msk [vmem:[%s1597_s13 + $0x10] sm:$0xff] %vm988_vm6, %v1402_v61 }
 0x512   : > { %1346 = shalt.err (!%p1343_p3)
}
 0x513   : > { %s1347_s25 = scalar_lea.hbm %s1645_s22, 512  ;;  %s1351_s18 = scalar_lea.hbm %s1708_s8, 1536 }
 0x514   : > { %p1348_p4 = scmp.ne.s32.totalorder %s1645_s22, %s1347_s25  ;;  %p1352_p9 = scmp.lt.u32.totalorder %s1645_s22, %s1708_s8 }
 0x515   : > { %p1353_p10 = scmp.lt.u32.totalorder %s1351_s18, %s1347_s25  ;;  %p1355_p12 = scmp.lt.u32.totalorder %s1347_s25, %s1645_s22 }
 0x516   : > { %p1349_p7 = pnand %p1348_p4, %p1492_p5 }
 0x517   : > { %p1354_p11 = por %p1353_p10, %p1352_p9 }
 0x518   : > { %p1350_p8 = pneg %p1349_p7 }
 0x519   : > { %p1356_p13 = por %p1355_p12, %p1354_p11 }
 0x51b   : > { %p1357_p0 = pnand %p1356_p13, %p1350_p8 }
 0x51d   : > { %1360 = shalt.err (!%p1357_p0)
}
 0x51e   : > { %s1404_s23 = smov 128   ;;  %s1405_s24 = smov 8  }
 0x51f   : > { %1268 = dma.vmem_to_hbm [thread:$0]  (%p1492_p5), %s1647_s21, 512, %s1645_s22, %s1659_s4, %s1404_s23, %s1404_s23, %s1405_s24  }
 0x520 PF: > { %p1274_p1 = scmp.ge.s32.totalorder %s1395_s10, 2  ;;  %s1022_s26 = sand.u32 1, %s1383_s29  }
 0x521   : > { %s1023_s27 = scalar_lea.sflag [#allocation4], %s1022_s26 }
 0x522   : > { %p1271_p2 = pnand %p1274_p1, %p1496_p6 }
 0x524   : > { %1378 = dma.done.wait (!%p1271_p2), %s1023_s27, 512  }
 0x525   : > { %1380 = vsyncadd (!%p1271_p2), %s1023_s27, 4294966784  ;;  %p20_p3 = scmp.ge.s32.totalorder %s1479_s12, 5   ;;  %s1711_s29 = smov %s1387_s30 }
 0x526   : > { %s1712_s30 = smov %s1391_s9  ;;  %s1713_s9 = smov %s1490_s15 }
 0x527   : > { %s1714_s10 = smov %s1479_s12  ;;  %22 = sbr.rel (!%p20_p3) target bundleno = 6 (0x6), region = 87 }
 0x52e   :  { %1028 = vsyncpa [#allocation4], 1 }
 0x52f   :  { %1030 = vsyncpa [#allocation4 + $0x1], 1 }

</bundles_post_ra>
